<compile_context>
chip_gen: v7x
topology: tpu7x:2x2x1
jax: 0.10.0
libtpu: 0.0.40
codegen_flags: <defaults>
</compile_context>

<pallas_src>
import functools

import jax
import jax.numpy as jnp
from jax.experimental import pallas as pl
from jax.experimental.pallas import tpu as pltpu


def _mhsa_kernel(x_ref, wq_ref, wk_ref, wv_ref, wproj_ref, o_ref,
                 k_scr, v_scr, y_scr,
                 *, n_heads, emb_dim, is_causal, q_tile):
    """One (batch element, query tile) per grid step.

    x_ref:     (1, T, C) VMEM  — full sequence (same block across qi)
    wq_ref:    (C, C)  bf16    — pre-transposed Q weight, 1/sqrt(D) folded in
    wk_ref:    (C, C)  bf16    — pre-transposed K weight
    wv_ref:    (C, C)  bf16    — pre-transposed V weight
    wproj_ref: (C, C)  bf16    — pre-transposed output projection weight
    o_ref:     (1, tq, C) VMEM
    k_scr:     (T, C) bf16 VMEM — K projection, cached across query tiles
    v_scr:     (T, C) bf16 VMEM — V projection, cached across query tiles
    y_scr:     (tq, C) f32 VMEM — per-head attention outputs
    """
    C = emb_dim
    H = n_heads
    D = C // H
    tq = q_tile
    T = x_ref.shape[1]
    qi = pl.program_id(1)

    # K/V projections once per batch element; resident across all query tiles.
    @pl.when(qi == 0)
    def _():
        xs = x_ref[0].astype(jnp.bfloat16)                         # (T, C)
        k_scr[...] = jnp.dot(
            xs, wk_ref[...],
            preferred_element_type=jnp.float32).astype(jnp.bfloat16)
        v_scr[...] = jnp.dot(
            xs, wv_ref[...],
            preferred_element_type=jnp.float32).astype(jnp.bfloat16)

    # Q projection for this query tile only (scale already folded into wq).
    start = pl.multiple_of(qi * tq, tq)
    xq = x_ref[0, pl.ds(start, tq), :].astype(jnp.bfloat16)        # (tq, C)
    q = jnp.dot(xq, wq_ref[...],
                preferred_element_type=jnp.float32).astype(jnp.bfloat16)

    if is_causal:
        row = qi * tq + jax.lax.broadcasted_iota(jnp.int32, (tq, T), 0)
        col = jax.lax.broadcasted_iota(jnp.int32, (tq, T), 1)
        causal_mask = row >= col                                   # (tq, T)

    # Contract last dims of both operands (trans_b semantics) — no K transpose.
    dn_qk = (((1,), (1,)), ((), ()))

    # Static per-head loop (H is small); each head is a pair of small matmuls.
    for h in range(H):
        sl = slice(h * D, (h + 1) * D)
        qh = q[:, sl]                    # (tq, D)
        kh = k_scr[:, sl]                # (T, D)  bf16, from resident scratch
        vh = v_scr[:, sl]                # (T, D)

        s = jax.lax.dot_general(qh, kh, dn_qk,
                                preferred_element_type=jnp.float32)  # (tq, T)
        if is_causal:
            s = jnp.where(causal_mask, s, jnp.float32(-1e30))

        # Numerically stable softmax along keys, in f32.
        m = jnp.max(s, axis=-1, keepdims=True)
        e = jnp.exp(s - m)
        p = e * pl.reciprocal(jnp.sum(e, axis=-1, keepdims=True), approx=True)

        # Write this head's output straight into the resident VMEM scratch.
        y_scr[:, sl] = jnp.dot(p.astype(jnp.bfloat16), vh,
                               preferred_element_type=jnp.float32)

    # Output projection: (tq, C) @ (C, C).
    out = jnp.dot(y_scr[...].astype(jnp.bfloat16), wproj_ref[...],
                  preferred_element_type=jnp.float32)

    # resid_dropout: identity (eval mode / p_dropout = 0.0).
    o_ref[0] = out.astype(o_ref.dtype)


def multi_head_self_attention(x, tok_mask, w_qkv, w_proj, *, n_heads,
                              is_causal=False):
    """Pallas wrapper.  tok_mask is accepted but unused (matches the PyTorch
    forward, which passes attn_mask=None to SDPA)."""
    del tok_mask  # unused by design — see module semantics note above.
    B, T, C = x.shape
    assert C % n_heads == 0
    assert w_qkv.shape == (3 * C, C)
    assert w_proj.shape == (C, C)
    D = C // n_heads

    # Query-tile size: whole sequence for short T, else 128-row tiles.
    tq = T if T <= 128 else 128
    if T % tq != 0:
        tq = T                       # fall back to untiled if T not divisible
    n_qt = T // tq

    # Pre-transpose, split and bf16-cast the weights once in HBM; fold the
    # 1/sqrt(D) attention scale into W_q (f32 math, then cast).
    scale = 1.0 / jnp.sqrt(jnp.float32(D))
    w_q_t = (jnp.transpose(w_qkv[:C, :]) * scale).astype(jnp.bfloat16)   # (C, C)
    w_k_t = jnp.transpose(w_qkv[C:2 * C, :]).astype(jnp.bfloat16)        # (C, C)
    w_v_t = jnp.transpose(w_qkv[2 * C:, :]).astype(jnp.bfloat16)         # (C, C)
    w_proj_t = jnp.transpose(w_proj).astype(jnp.bfloat16)                # (C, C)

    kernel = functools.partial(_mhsa_kernel, n_heads=n_heads, emb_dim=C,
                               is_causal=is_causal, q_tile=tq)

    # TODO(synk): for very long sequences, stream K/V tiles with an online
    # softmax (flash pattern) instead of keeping the full (T, C) K/V resident.
    return pl.pallas_call(
        kernel,
        out_shape=jax.ShapeDtypeStruct((B, T, C), x.dtype),
        grid_spec=pltpu.PrefetchScalarGridSpec(
            num_scalar_prefetch=0,
            grid=(B, n_qt),
            in_specs=[
                # full sequence; same block across qi -> DMA'd once per batch
                pl.BlockSpec((1, T, C), lambda b, qi: (b, 0, 0)),
                pl.BlockSpec((C, C), lambda b, qi: (0, 0)),
                pl.BlockSpec((C, C), lambda b, qi: (0, 0)),
                pl.BlockSpec((C, C), lambda b, qi: (0, 0)),
                pl.BlockSpec((C, C), lambda b, qi: (0, 0)),
            ],
            out_specs=pl.BlockSpec((1, tq, C), lambda b, qi: (b, qi, 0)),
            scratch_shapes=[
                pltpu.VMEM((T, C), jnp.bfloat16),   # K cache
                pltpu.VMEM((T, C), jnp.bfloat16),   # V cache
                pltpu.VMEM((tq, C), jnp.float32),   # per-head output assembly
            ],
        ),
        compiler_params=pltpu.CompilerParams(
            # qi must be serial ("arbitrary"): the K/V scratch is filled at
            # qi == 0 and reused by later query tiles of the same batch.
            dimension_semantics=("parallel", "arbitrary"),
            vmem_limit_bytes=64 * 1024 * 1024),
    )(x, w_q_t, w_k_t, w_v_t, w_proj_t)


def _reference(x, w_qkv, w_proj, n_heads, is_causal):
    """Plain-JAX f32 reference for sanity checking."""
    B, T, C = x.shape
    D = C // n_heads
    qkv = jnp.einsum("btc,oc->bto", x, w_qkv)
    q, k, v = jnp.split(qkv, 3, axis=-1)
    q = q.reshape(B, T, n_heads, D).transpose(0, 2, 1, 3)
    k = k.reshape(B, T, n_heads, D).transpose(0, 2, 1, 3)
    v = v.reshape(B, T, n_heads, D).transpose(0, 2, 1, 3)
    s = jnp.einsum("bhtd,bhsd->bhts", q, k) / jnp.sqrt(jnp.float32(D))
    if is_causal:
        mask = jnp.tril(jnp.ones((T, T), dtype=bool))
        s = jnp.where(mask[None, None], s, -1e30)
    p = jax.nn.softmax(s, axis=-1)
    y = jnp.einsum("bhts,bhsd->bhtd", p, v)
    y = y.transpose(0, 2, 1, 3).reshape(B, T, C)
    return jnp.einsum("btc,oc->bto", y, w_proj)


if __name__ == "__main__":
    # Module config (small, deterministic).
    n_heads = 4
    emb_dim = 32          # C
    dropout = 0.0         # eval semantics

    B, T, C = 2, 8, emb_dim

    key = jax.random.PRNGKey(0)
    kx, kq, kp, _ = jax.random.split(key, 4)

    x = jax.random.normal(kx, (B, T, C), dtype=jnp.float32)
    tok_mask = jnp.ones((B, T), dtype=bool)  # unused (attn_mask=None in SDPA)

    # Deterministic synthetic weights (nn.Linear shapes, bias=False).
    w_qkv = 0.02 * jax.random.normal(kq, (3 * C, C), dtype=jnp.float32)
    w_proj = 0.02 * jax.random.normal(kp, (C, C), dtype=jnp.float32)

    # Matmul operands are bf16 (f32 accumulation), so use a loose-but-tight-
    # enough tolerance vs the pure-f32 reference.
    for is_causal in (False, True):
        out = multi_head_self_attention(x, tok_mask, w_qkv, w_proj,
                                        n_heads=n_heads, is_causal=is_causal)
        out = jax.block_until_ready(out)
        ref = _reference(x, w_qkv, w_proj, n_heads, is_causal)
        assert out.shape == (B, T, C)
        assert jnp.allclose(out, ref, atol=1e-2, rtol=1e-2), (
            f"mismatch vs reference (is_causal={is_causal})")

    # TODO(synk): dropout (p_dropout > 0, training mode) not implemented;
    # eval-mode identity is used, matching inference semantics.
    print("KERNEL_OK")
</pallas_src>

<mosaic_0001>
module attributes {stable_mosaic.version = 11 : i64} {
  func.func @_mhsa_kernel(%arg0: i32, %arg1: i32, %arg2: memref<1x8x32xf32, #tpu.memory_space<vmem>>, %arg3: memref<32x32xbf16, #tpu.memory_space<vmem>>, %arg4: memref<32x32xbf16, #tpu.memory_space<vmem>>, %arg5: memref<32x32xbf16, #tpu.memory_space<vmem>>, %arg6: memref<32x32xbf16, #tpu.memory_space<vmem>>, %arg7: memref<1x8x32xf32, #tpu.memory_space<vmem>>, %arg8: memref<8x32xbf16, #tpu.memory_space<vmem>>, %arg9: memref<8x32xbf16, #tpu.memory_space<vmem>>, %arg10: memref<8x32xf32, #tpu.memory_space<vmem>>) attributes {dimension_semantics = [#tpu.dimension_semantics<parallel>, #tpu.dimension_semantics<arbitrary>], iteration_bounds = array<i64: 2, 1>, scalar_prefetch = 0 : i64, scratch_operands = 3 : i64, tpu.core_type = #tpu.core_type<tc>, window_params = [{transform_indices = @transform_0, window_bounds = array<i64: 1, 8, 32>}, {pipeline_mode = #tpu.pipeline_mode<synchronous>, transform_indices = @transform_1, window_bounds = array<i64: 32, 32>}, {pipeline_mode = #tpu.pipeline_mode<synchronous>, transform_indices = @transform_2, window_bounds = array<i64: 32, 32>}, {pipeline_mode = #tpu.pipeline_mode<synchronous>, transform_indices = @transform_3, window_bounds = array<i64: 32, 32>}, {pipeline_mode = #tpu.pipeline_mode<synchronous>, transform_indices = @transform_4, window_bounds = array<i64: 32, 32>}, {transform_indices = @transform_5, window_bounds = array<i64: 1, 8, 32>}]} {
    %c0_i32 = arith.constant 0 : i32
    %0 = arith.cmpi eq, %arg1, %c0_i32 : i32
    %1 = arith.extui %0 : i1 to i32
    %c0_i32_0 = arith.constant 0 : i32
    %2 = arith.cmpi ne, %1, %c0_i32_0 : i32
    scf.if %2 {
      %c0_49 = arith.constant 0 : index
      %c0_50 = arith.constant 0 : index
      %c0_51 = arith.constant 0 : index
      %87 = vector.load %arg2[%c0_49, %c0_50, %c0_51] : memref<1x8x32xf32, #tpu.memory_space<vmem>>, vector<1x8x32xf32>
      %88 = vector.shape_cast %87 : vector<1x8x32xf32> to vector<8x32xf32>
      %89 = arith.truncf %88 : vector<8x32xf32> to vector<8x32xbf16>
      %c0_52 = arith.constant 0 : index
      %c0_53 = arith.constant 0 : index
      %90 = vector.load %arg4[%c0_52, %c0_53] : memref<32x32xbf16, #tpu.memory_space<vmem>>, vector<32x32xbf16>
      %cst_54 = arith.constant dense<0.000000e+00> : vector<8x32xf32>
      %91 = tpu.matmul %89, %90, %cst_54 {dimension_numbers = #tpu.dot_dimension_numbers<[1], [0], [0], [1], [0, 0, 1, 1], [], []>} : vector<8x32xbf16>, vector<32x32xbf16>, vector<8x32xf32> -> vector<8x32xf32>
      %92 = arith.truncf %91 : vector<8x32xf32> to vector<8x32xbf16>
      %c0_55 = arith.constant 0 : index
      %c0_56 = arith.constant 0 : index
      %93 = vector.load %arg8[%c0_55, %c0_56] : memref<8x32xbf16, #tpu.memory_space<vmem>>, vector<8x32xbf16>
      tpu.vector_store %arg8[%c0_55, %c0_56], %92 {strides = array<i32>} : memref<8x32xbf16, #tpu.memory_space<vmem>>, vector<8x32xbf16>,
      %c0_57 = arith.constant 0 : index
      %c0_58 = arith.constant 0 : index
      %94 = vector.load %arg5[%c0_57, %c0_58] : memref<32x32xbf16, #tpu.memory_space<vmem>>, vector<32x32xbf16>
      %cst_59 = arith.constant dense<0.000000e+00> : vector<8x32xf32>
      %95 = tpu.matmul %89, %94, %cst_59 {dimension_numbers = #tpu.dot_dimension_numbers<[1], [0], [0], [1], [0, 0, 1, 1], [], []>} : vector<8x32xbf16>, vector<32x32xbf16>, vector<8x32xf32> -> vector<8x32xf32>
      %96 = arith.truncf %95 : vector<8x32xf32> to vector<8x32xbf16>
      %c0_60 = arith.constant 0 : index
      %c0_61 = arith.constant 0 : index
      %97 = vector.load %arg9[%c0_60, %c0_61] : memref<8x32xbf16, #tpu.memory_space<vmem>>, vector<8x32xbf16>
      tpu.vector_store %arg9[%c0_60, %c0_61], %96 {strides = array<i32>} : memref<8x32xbf16, #tpu.memory_space<vmem>>, vector<8x32xbf16>,
    } else {
    }
    %c8_i32 = arith.constant 8 : i32
    %3 = arith.muli %arg1, %c8_i32 : i32
    %4 = tpu.assume_multiple %3, 8 : i32
    %c0 = arith.constant 0 : index
    %5 = arith.index_cast %4 : i32 to index
    %c0_1 = arith.constant 0 : index
    %6 = vector.load %arg2[%c0, %5, %c0_1] : memref<1x8x32xf32, #tpu.memory_space<vmem>>, vector<1x8x32xf32>
    %7 = vector.shape_cast %6 : vector<1x8x32xf32> to vector<8x32xf32>
    %8 = arith.truncf %7 : vector<8x32xf32> to vector<8x32xbf16>
    %c0_2 = arith.constant 0 : index
    %c0_3 = arith.constant 0 : index
    %9 = vector.load %arg3[%c0_2, %c0_3] : memref<32x32xbf16, #tpu.memory_space<vmem>>, vector<32x32xbf16>
    %cst = arith.constant dense<0.000000e+00> : vector<8x32xf32>
    %10 = tpu.matmul %8, %9, %cst {dimension_numbers = #tpu.dot_dimension_numbers<[1], [0], [0], [1], [0, 0, 1, 1], [], []>} : vector<8x32xbf16>, vector<32x32xbf16>, vector<8x32xf32> -> vector<8x32xf32>
    %11 = arith.truncf %10 : vector<8x32xf32> to vector<8x32xbf16>
    %12 = vector.extract_strided_slice %11 {offsets = [0, 0], sizes = [8, 8], strides = [1, 1]} : vector<8x32xbf16> to vector<8x8xbf16>
    %c0_4 = arith.constant 0 : index
    %c0_5 = arith.constant 0 : index
    %13 = vector.load %arg8[%c0_4, %c0_5] : memref<8x32xbf16, #tpu.memory_space<vmem>>, vector<8x8xbf16>
    %c0_6 = arith.constant 0 : index
    %c0_7 = arith.constant 0 : index
    %14 = vector.load %arg9[%c0_6, %c0_7] : memref<8x32xbf16, #tpu.memory_space<vmem>>, vector<8x8xbf16>
    %cst_8 = arith.constant dense<0.000000e+00> : vector<8x8xf32>
    %15 = tpu.matmul %12, %13, %cst_8 {dimension_numbers = #tpu.dot_dimension_numbers<[1], [1], [0], [0], [0, 0, 1, 0], [], []>} : vector<8x8xbf16>, vector<8x8xbf16>, vector<8x8xf32> -> vector<8x8xf32>
    %cst_9 = arith.constant dense<0xFF800000> : vector<8xf32>
    %16 = vector.multi_reduction <maximumf>, %15, %cst_9 [1] : vector<8x8xf32> to vector<8xf32>
    %17 = vector.shape_cast %16 : vector<8xf32> to vector<8x1xf32>
    %18 = vector.broadcast %17 : vector<8x1xf32> to vector<8x8xf32>
    %19 = arith.subf %15, %18 : vector<8x8xf32>
    %20 = math.exp %19 : vector<8x8xf32>
    %cst_10 = arith.constant dense<0.000000e+00> : vector<8xf32>
    %21 = vector.multi_reduction <add>, %20, %cst_10 [1] : vector<8x8xf32> to vector<8xf32>
    %22 = vector.shape_cast %21 : vector<8xf32> to vector<8x1xf32>
    %23 = tpu.reciprocal %22 {approx = true} : vector<8x1xf32> -> vector<8x1xf32>
    %24 = vector.broadcast %23 : vector<8x1xf32> to vector<8x8xf32>
    %25 = arith.mulf %20, %24 : vector<8x8xf32>
    %26 = arith.truncf %25 : vector<8x8xf32> to vector<8x8xbf16>
    %cst_11 = arith.constant dense<0.000000e+00> : vector<8x8xf32>
    %27 = tpu.matmul %26, %14, %cst_11 {dimension_numbers = #tpu.dot_dimension_numbers<[1], [0], [0], [1], [0, 0, 1, 1], [], []>} : vector<8x8xbf16>, vector<8x8xbf16>, vector<8x8xf32> -> vector<8x8xf32>
    %c0_12 = arith.constant 0 : index
    %c0_13 = arith.constant 0 : index
    %28 = vector.load %arg10[%c0_12, %c0_13] : memref<8x32xf32, #tpu.memory_space<vmem>>, vector<8x8xf32>
    tpu.vector_store %arg10[%c0_12, %c0_13], %27 {strides = array<i32>} : memref<8x32xf32, #tpu.memory_space<vmem>>, vector<8x8xf32>,
    %29 = vector.extract_strided_slice %11 {offsets = [0, 8], sizes = [8, 8], strides = [1, 1]} : vector<8x32xbf16> to vector<8x8xbf16>
    %c0_14 = arith.constant 0 : index
    %c8 = arith.constant 8 : index
    %30 = vector.load %arg8[%c0_14, %c8] : memref<8x32xbf16, #tpu.memory_space<vmem>>, vector<8x8xbf16>
    %c0_15 = arith.constant 0 : index
    %c8_16 = arith.constant 8 : index
    %31 = vector.load %arg9[%c0_15, %c8_16] : memref<8x32xbf16, #tpu.memory_space<vmem>>, vector<8x8xbf16>
    %cst_17 = arith.constant dense<0.000000e+00> : vector<8x8xf32>
    %32 = tpu.matmul %29, %30, %cst_17 {dimension_numbers = #tpu.dot_dimension_numbers<[1], [1], [0], [0], [0, 0, 1, 0], [], []>} : vector<8x8xbf16>, vector<8x8xbf16>, vector<8x8xf32> -> vector<8x8xf32>
    %cst_18 = arith.constant dense<0xFF800000> : vector<8xf32>
    %33 = vector.multi_reduction <maximumf>, %32, %cst_18 [1] : vector<8x8xf32> to vector<8xf32>
    %34 = vector.shape_cast %33 : vector<8xf32> to vector<8x1xf32>
    %35 = vector.broadcast %34 : vector<8x1xf32> to vector<8x8xf32>
    %36 = arith.subf %32, %35 : vector<8x8xf32>
    %37 = math.exp %36 : vector<8x8xf32>
    %cst_19 = arith.constant dense<0.000000e+00> : vector<8xf32>
    %38 = vector.multi_reduction <add>, %37, %cst_19 [1] : vector<8x8xf32> to vector<8xf32>
    %39 = vector.shape_cast %38 : vector<8xf32> to vector<8x1xf32>
    %40 = tpu.reciprocal %39 {approx = true} : vector<8x1xf32> -> vector<8x1xf32>
    %41 = vector.broadcast %40 : vector<8x1xf32> to vector<8x8xf32>
    %42 = arith.mulf %37, %41 : vector<8x8xf32>
    %43 = arith.truncf %42 : vector<8x8xf32> to vector<8x8xbf16>
    %cst_20 = arith.constant dense<0.000000e+00> : vector<8x8xf32>
    %44 = tpu.matmul %43, %31, %cst_20 {dimension_numbers = #tpu.dot_dimension_numbers<[1], [0], [0], [1], [0, 0, 1, 1], [], []>} : vector<8x8xbf16>, vector<8x8xbf16>, vector<8x8xf32> -> vector<8x8xf32>
    %c0_21 = arith.constant 0 : index
    %c8_22 = arith.constant 8 : index
    %45 = vector.load %arg10[%c0_21, %c8_22] : memref<8x32xf32, #tpu.memory_space<vmem>>, vector<8x8xf32>
    tpu.vector_store %arg10[%c0_21, %c8_22], %44 {strides = array<i32>} : memref<8x32xf32, #tpu.memory_space<vmem>>, vector<8x8xf32>,
    %46 = vector.extract_strided_slice %11 {offsets = [0, 16], sizes = [8, 8], strides = [1, 1]} : vector<8x32xbf16> to vector<8x8xbf16>
    %c0_23 = arith.constant 0 : index
    %c16 = arith.constant 16 : index
    %47 = vector.load %arg8[%c0_23, %c16] : memref<8x32xbf16, #tpu.memory_space<vmem>>, vector<8x8xbf16>
    %c0_24 = arith.constant 0 : index
    %c16_25 = arith.constant 16 : index
    %48 = vector.load %arg9[%c0_24, %c16_25] : memref<8x32xbf16, #tpu.memory_space<vmem>>, vector<8x8xbf16>
    %cst_26 = arith.constant dense<0.000000e+00> : vector<8x8xf32>
    %49 = tpu.matmul %46, %47, %cst_26 {dimension_numbers = #tpu.dot_dimension_numbers<[1], [1], [0], [0], [0, 0, 1, 0], [], []>} : vector<8x8xbf16>, vector<8x8xbf16>, vector<8x8xf32> -> vector<8x8xf32>
    %cst_27 = arith.constant dense<0xFF800000> : vector<8xf32>
    %50 = vector.multi_reduction <maximumf>, %49, %cst_27 [1] : vector<8x8xf32> to vector<8xf32>
    %51 = vector.shape_cast %50 : vector<8xf32> to vector<8x1xf32>
    %52 = vector.broadcast %51 : vector<8x1xf32> to vector<8x8xf32>
    %53 = arith.subf %49, %52 : vector<8x8xf32>
    %54 = math.exp %53 : vector<8x8xf32>
    %cst_28 = arith.constant dense<0.000000e+00> : vector<8xf32>
    %55 = vector.multi_reduction <add>, %54, %cst_28 [1] : vector<8x8xf32> to vector<8xf32>
    %56 = vector.shape_cast %55 : vector<8xf32> to vector<8x1xf32>
    %57 = tpu.reciprocal %56 {approx = true} : vector<8x1xf32> -> vector<8x1xf32>
    %58 = vector.broadcast %57 : vector<8x1xf32> to vector<8x8xf32>
    %59 = arith.mulf %54, %58 : vector<8x8xf32>
    %60 = arith.truncf %59 : vector<8x8xf32> to vector<8x8xbf16>
    %cst_29 = arith.constant dense<0.000000e+00> : vector<8x8xf32>
    %61 = tpu.matmul %60, %48, %cst_29 {dimension_numbers = #tpu.dot_dimension_numbers<[1], [0], [0], [1], [0, 0, 1, 1], [], []>} : vector<8x8xbf16>, vector<8x8xbf16>, vector<8x8xf32> -> vector<8x8xf32>
    %c0_30 = arith.constant 0 : index
    %c16_31 = arith.constant 16 : index
    %62 = vector.load %arg10[%c0_30, %c16_31] : memref<8x32xf32, #tpu.memory_space<vmem>>, vector<8x8xf32>
    tpu.vector_store %arg10[%c0_30, %c16_31], %61 {strides = array<i32>} : memref<8x32xf32, #tpu.memory_space<vmem>>, vector<8x8xf32>,
    %63 = vector.extract_strided_slice %11 {offsets = [0, 24], sizes = [8, 8], strides = [1, 1]} : vector<8x32xbf16> to vector<8x8xbf16>
    %c0_32 = arith.constant 0 : index
    %c24 = arith.constant 24 : index
    %64 = vector.load %arg8[%c0_32, %c24] : memref<8x32xbf16, #tpu.memory_space<vmem>>, vector<8x8xbf16>
    %c0_33 = arith.constant 0 : index
    %c24_34 = arith.constant 24 : index
    %65 = vector.load %arg9[%c0_33, %c24_34] : memref<8x32xbf16, #tpu.memory_space<vmem>>, vector<8x8xbf16>
    %cst_35 = arith.constant dense<0.000000e+00> : vector<8x8xf32>
    %66 = tpu.matmul %63, %64, %cst_35 {dimension_numbers = #tpu.dot_dimension_numbers<[1], [1], [0], [0], [0, 0, 1, 0], [], []>} : vector<8x8xbf16>, vector<8x8xbf16>, vector<8x8xf32> -> vector<8x8xf32>
    %cst_36 = arith.constant dense<0xFF800000> : vector<8xf32>
    %67 = vector.multi_reduction <maximumf>, %66, %cst_36 [1] : vector<8x8xf32> to vector<8xf32>
    %68 = vector.shape_cast %67 : vector<8xf32> to vector<8x1xf32>
    %69 = vector.broadcast %68 : vector<8x1xf32> to vector<8x8xf32>
    %70 = arith.subf %66, %69 : vector<8x8xf32>
    %71 = math.exp %70 : vector<8x8xf32>
    %cst_37 = arith.constant dense<0.000000e+00> : vector<8xf32>
    %72 = vector.multi_reduction <add>, %71, %cst_37 [1] : vector<8x8xf32> to vector<8xf32>
    %73 = vector.shape_cast %72 : vector<8xf32> to vector<8x1xf32>
    %74 = tpu.reciprocal %73 {approx = true} : vector<8x1xf32> -> vector<8x1xf32>
    %75 = vector.broadcast %74 : vector<8x1xf32> to vector<8x8xf32>
    %76 = arith.mulf %71, %75 : vector<8x8xf32>
    %77 = arith.truncf %76 : vector<8x8xf32> to vector<8x8xbf16>
    %cst_38 = arith.constant dense<0.000000e+00> : vector<8x8xf32>
    %78 = tpu.matmul %77, %65, %cst_38 {dimension_numbers = #tpu.dot_dimension_numbers<[1], [0], [0], [1], [0, 0, 1, 1], [], []>} : vector<8x8xbf16>, vector<8x8xbf16>, vector<8x8xf32> -> vector<8x8xf32>
    %c0_39 = arith.constant 0 : index
    %c24_40 = arith.constant 24 : index
    %79 = vector.load %arg10[%c0_39, %c24_40] : memref<8x32xf32, #tpu.memory_space<vmem>>, vector<8x8xf32>
    tpu.vector_store %arg10[%c0_39, %c24_40], %78 {strides = array<i32>} : memref<8x32xf32, #tpu.memory_space<vmem>>, vector<8x8xf32>,
    %c0_41 = arith.constant 0 : index
    %c0_42 = arith.constant 0 : index
    %80 = vector.load %arg10[%c0_41, %c0_42] : memref<8x32xf32, #tpu.memory_space<vmem>>, vector<8x32xf32>
    %81 = arith.truncf %80 : vector<8x32xf32> to vector<8x32xbf16>
    %c0_43 = arith.constant 0 : index
    %c0_44 = arith.constant 0 : index
    %82 = vector.load %arg6[%c0_43, %c0_44] : memref<32x32xbf16, #tpu.memory_space<vmem>>, vector<32x32xbf16>
    %cst_45 = arith.constant dense<0.000000e+00> : vector<8x32xf32>
    %83 = tpu.matmul %81, %82, %cst_45 {dimension_numbers = #tpu.dot_dimension_numbers<[1], [0], [0], [1], [0, 0, 1, 1], [], []>} : vector<8x32xbf16>, vector<32x32xbf16>, vector<8x32xf32> -> vector<8x32xf32>
    %c0_46 = arith.constant 0 : index
    %c0_47 = arith.constant 0 : index
    %c0_48 = arith.constant 0 : index
    %84 = vector.load %arg7[%c0_46, %c0_47, %c0_48] : memref<1x8x32xf32, #tpu.memory_space<vmem>>, vector<1x8x32xf32>
    %85 = vector.shape_cast %84 : vector<1x8x32xf32> to vector<8x32xf32>
    %86 = vector.shape_cast %83 : vector<8x32xf32> to vector<1x8x32xf32>
    tpu.vector_store %arg7[%c0_46, %c0_47, %c0_48], %86 {strides = array<i32>} : memref<1x8x32xf32, #tpu.memory_space<vmem>>, vector<1x8x32xf32>,
    return
  }
  func.func @transform_0(%arg0: i32, %arg1: i32) -> (i32, i32, i32) {
    %c0_i32 = arith.constant 0 : i32
    %c0_i32_0 = arith.constant 0 : i32
    %c0_i32_1 = arith.constant 0 : i32
    return %arg0, %c0_i32, %c0_i32_0 : i32, i32, i32
  }
  func.func @transform_1(%arg0: i32, %arg1: i32) -> (i32, i32) {
    %c0_i32 = arith.constant 0 : i32
    %c0_i32_0 = arith.constant 0 : i32
    %c0_i32_1 = arith.constant 0 : i32
    return %c0_i32, %c0_i32_0 : i32, i32
  }
  func.func @transform_2(%arg0: i32, %arg1: i32) -> (i32, i32) {
    %c0_i32 = arith.constant 0 : i32
    %c0_i32_0 = arith.constant 0 : i32
    %c0_i32_1 = arith.constant 0 : i32
    return %c0_i32, %c0_i32_0 : i32, i32
  }
  func.func @transform_3(%arg0: i32, %arg1: i32) -> (i32, i32) {
    %c0_i32 = arith.constant 0 : i32
    %c0_i32_0 = arith.constant 0 : i32
    %c0_i32_1 = arith.constant 0 : i32
    return %c0_i32, %c0_i32_0 : i32, i32
  }
  func.func @transform_4(%arg0: i32, %arg1: i32) -> (i32, i32) {
    %c0_i32 = arith.constant 0 : i32
    %c0_i32_0 = arith.constant 0 : i32
    %c0_i32_1 = arith.constant 0 : i32
    return %c0_i32, %c0_i32_0 : i32, i32
  }
  func.func @transform_5(%arg0: i32, %arg1: i32) -> (i32, i32, i32) {
    %c0_i32 = arith.constant 0 : i32
    %c0_i32_0 = arith.constant 0 : i32
    return %arg0, %arg1, %c0_i32 : i32, i32, i32
  }
}

</mosaic_0001>

<bundles_post_ra>
// kernel: tpu_custom_call.1
= control target key start
LH: loop header
LB: loop body
LE: loop exit
PB: predicated region body
PF: predicated region fallthrough
CT: control target
= control target key end

     0   :  { %10 = vsyncpa [#allocation6], 0  ;;  %s2153_s0 = inlined_call_operand.hbm [shape: f32[2,8,32], index: 0, kind: input, shape index: {}]   ;;  %s2154_s1 = inlined_call_operand.hbm [shape: bf16[32,32], index: 1, kind: input, shape index: {}]   ;;  %s2155_s2 = inlined_call_operand.hbm [shape: bf16[32,32], index: 2, kind: input, shape index: {}]   ;;  %s2156_s3 = inlined_call_operand.hbm [shape: bf16[32,32], index: 3, kind: input, shape index: {}]   ;;  %s2157_s4 = inlined_call_operand.hbm [shape: bf16[32,32], index: 4, kind: input, shape index: {}]   ;;  %s2158_s5 = inlined_call_operand.hbm [shape: f32[2,8,32], index: 5, kind: output, shape index: {}]  }
   0x1   :  { %12 = vsyncpa [#allocation6 + $0x1], 0 }
   0x2   :  { %13 = vsyncpa [#allocation9], 0 }
   0x3   :  { %14 = vsyncpa [#allocation12], 0 }
   0x4   :  { %15 = vsyncpa [#allocation7], 0 }
   0x5   :  { %17 = vsyncpa [#allocation7 + $0x1], 0  ;;  %s1761_s18 = smov 0   ;;  %s1763_s19 = smov 0  }
   0x6   :  { %s1765_s20 = smov 0   ;;  %s1767_s21 = smov 0  }
   0x7   :  { %s1769_s22 = smov 0   ;;  %s1771_s23 = smov 0  }
   0x8 LB: > { %s1183_s24 = sadd.s32 4294967295, %s1713_s23   ;;  %p1185_p0 = scmp.ge.s32.totalorder %s1713_s23, 1  ;;  %s1713_s23 = sphi %s1771_s23, %s23_s23   ;;  %s1709_s22 = sphi %s1769_s22, %s2182_s22   ;;  %s1705_s21 = sphi %s1767_s21, %s2181_s21   ;;  %s1701_s20 = sphi %s1765_s20, %s2180_s20   ;;  %s1697_s19 = sphi %s1763_s19, %s2179_s19   ;;  %s1693_s18 = sphi %s1761_s18, %s2178_s18  }
   0x9   : > { %p1795_p1 = scmp.eq.s32.totalorder %s1183_s24, 0  ;;  %p178_p2 = scmp.lt.s32.totalorder %s1713_s23, 3 }
   0xa   : > { %s1715_s27 = smov [#allocation8]   ;;  %s1716_s30 = smov [#allocation11]  }
   0xb   : > { %s2163_s25 = scalar_select %p1795_p1, 1, 0 }
   0xc   : > { %p1800_p3 = pnand %p1185_p0, %p178_p2  ;;  %s190_s28 = sshll.u32 %s1715_s27, 4  ;;  %s1804_s28 = int_to_ptr.vmem [resolvable:$true] %s190_s28 }
   0xd   : > { %s216_s6 = sshll.u32 %s1716_s30, 4  ;;  %s1717_s7 = smov [#allocation10]   ;;  %s1815_s6 = int_to_ptr.vmem [resolvable:$true] %s216_s6 }
   0xe   : > { %s2164_s26 = scalar_select %p1800_p3, 1, 0 }
   0xf   : > { %p1358_p4 = pneg %p1800_p3  ;;  %s1817_s8 = sshll.u32 %s1717_s7, 4  ;;  %s204_s8 = int_to_ptr.vmem [resolvable:$true] %s1817_s8 }
  0x10   : > { %s1481_s11 = scalar_lea.hbm %s2154_s1, 256 }
  0x11   : > { %p1811_p6 = pnand %p1358_p4, %p1795_p1  ;;  %p1482_p7 = scmp.ne.s32.totalorder %s2154_s1, %s1481_s11 }
  0x12   : > { %p1488_p11 = scmp.lt.u32.totalorder %s1481_s11, %s2154_s1 }
  0x13   : > { %p1827_p8 = pneg %p1811_p6 }
  0x15   : > { %p1484_p9 = pnand %p1827_p8, %p1482_p7 }
  0x17   : > { %p1485_p10 = pneg %p1484_p9 }
  0x19   : > { %p1490_p12 = pnand %p1488_p11, %p1485_p10 }
  0x1b   : > { %1493 = shalt.err (!%p1490_p12)
}
  0x1c   : > { %s1494_s17 = scalar_lea.vmem %s1804_s28, 256  ;;  %p1502_p4 = scmp.lt.s32.totalorder %s1804_s28, %s1804_s28 }
  0x1d   : > { %p1495_p13 = scmp.ne.s32.totalorder %s1804_s28, %s1494_s17  ;;  %p1503_p5 = scmp.lt.s32.totalorder %s1494_s17, %s1494_s17 }
  0x1f   : > { %p1497_p0 = pnand %p1495_p13, %p1827_p8  ;;  %p1504_p7 = por %p1503_p5, %p1502_p4 }
  0x21   : > { %p1498_p2 = pneg %p1497_p0 }
  0x23   : > { %p1505_p9 = pnand %p1504_p7, %p1498_p2 }
  0x25   : > { %1508 = shalt.err (!%p1505_p9)
}
  0x26   : > { %s1718_s27 = smov 64   ;;  %s1719_s30 = smov 4  }
  0x27   : > { %1361 = dma.hbm_to_vmem [thread:$0]  (!%p1811_p6), %s2154_s1, 256, %s1804_s28, [#allocation9], %s1718_s27, %s1718_s27, %s1719_s30  }
  0x28   : > { %s1509_s12 = scalar_lea.hbm %s2156_s3, 256 }
  0x29   : > { %p1510_p5 = scmp.ne.s32.totalorder %s2156_s3, %s1509_s12  ;;  %p1516_p12 = scmp.lt.u32.totalorder %s1509_s12, %s2156_s3 }
  0x2b   : > { %p1512_p10 = pnand %p1510_p5, %p1827_p8 }
  0x2d   : > { %p1513_p11 = pneg %p1512_p10 }
  0x2f   : > { %p1518_p13 = pnand %p1516_p12, %p1513_p11 }
  0x31   : > { %1521 = shalt.err (!%p1518_p13)
}
  0x32   : > { %s1522_s28 = scalar_lea.vmem %s1815_s6, 256  ;;  %p1530_p7 = scmp.lt.s32.totalorder %s1815_s6, %s1815_s6 }
  0x33   : > { %p1523_p0 = scmp.ne.s32.totalorder %s1815_s6, %s1522_s28  ;;  %p1531_p9 = scmp.lt.s32.totalorder %s1522_s28, %s1522_s28 }
  0x35   : > { %p1525_p2 = pnand %p1523_p0, %p1827_p8  ;;  %p1532_p5 = por %p1531_p9, %p1530_p7 }
  0x37   : > { %p1526_p4 = pneg %p1525_p2 }
  0x39   : > { %p1533_p10 = pnand %p1532_p5, %p1526_p4 }
  0x3b   : > { %1536 = shalt.err (!%p1533_p10)
}
  0x3c   : > { %1367 = dma.hbm_to_vmem [thread:$0]  (!%p1811_p6), %s2156_s3, 256, %s1815_s6, [#allocation12], %s1718_s27, %s1718_s27, %s1719_s30  }
  0x3d   : > { %s1537_s12 = scalar_lea.hbm %s2155_s2, 256 }
  0x3e   : > { %p1538_p11 = scmp.ne.s32.totalorder %s2155_s2, %s1537_s12  ;;  %p1544_p0 = scmp.lt.u32.totalorder %s1537_s12, %s2155_s2 }
  0x40   : > { %p1540_p12 = pnand %p1538_p11, %p1827_p8 }
  0x42   : > { %p1541_p13 = pneg %p1540_p12 }
  0x44   : > { %p1546_p2 = pnand %p1544_p0, %p1541_p13 }
  0x46   : > { %1549 = shalt.err (!%p1546_p2)
}
  0x47   : > { %s1550_s28 = scalar_lea.vmem %s204_s8, 256  ;;  %p1558_p5 = scmp.lt.s32.totalorder %s204_s8, %s204_s8 }
  0x48   : > { %p1551_p4 = scmp.ne.s32.totalorder %s204_s8, %s1550_s28  ;;  %p1559_p10 = scmp.lt.s32.totalorder %s1550_s28, %s1550_s28 }
  0x4a   : > { %p1553_p7 = pnand %p1551_p4, %p1827_p8  ;;  %p1560_p3 = por %p1559_p10, %p1558_p5 }
  0x4c   : > { %p1554_p9 = pneg %p1553_p7 }
  0x4e   : > { %p1561_p1 = pnand %p1560_p3, %p1554_p9 }
  0x50   : > { %1564 = shalt.err (!%p1561_p1)
}
  0x51   : > { %1364 = dma.hbm_to_vmem [thread:$0]  (!%p1811_p6), %s2155_s2, 256, %s204_s8, [#allocation9], %s1718_s27, %s1718_s27, %s1719_s30  }
  0x52   : > { %s1720_s9 = smov [#allocation13]   ;;  %s1565_s13 = scalar_lea.hbm %s2157_s4, 256 }
  0x53   : > { %s229_s10 = sshll.u32 %s1720_s9, 4  ;;  %p1566_p1 = scmp.ne.s32.totalorder %s2157_s4, %s1565_s13  ;;  %s230_s10 = int_to_ptr.vmem [resolvable:$true] %s229_s10 }
  0x54   : > { %p1572_p12 = scmp.lt.u32.totalorder %s1565_s13, %s2157_s4 }
  0x55   : > { %p1568_p3 = pnand %p1566_p1, %p1827_p8 }
  0x57   : > { %p1569_p11 = pneg %p1568_p3 }
  0x59   : > { %p1574_p13 = pnand %p1572_p12, %p1569_p11 }
  0x5b   : > { %1577 = shalt.err (!%p1574_p13)
}
  0x5c   : > { %s1578_s8 = scalar_lea.vmem %s230_s10, 256  ;;  %p1586_p7 = scmp.lt.s32.totalorder %s230_s10, %s230_s10 }
  0x5d   : > { %p1579_p0 = scmp.ne.s32.totalorder %s230_s10, %s1578_s8  ;;  %p1587_p9 = scmp.lt.s32.totalorder %s1578_s8, %s1578_s8 }
  0x5f   : > { %p1581_p2 = pnand %p1579_p0, %p1827_p8  ;;  %p1588_p5 = por %p1587_p9, %p1586_p7 }
  0x61   : > { %p1582_p4 = pneg %p1581_p2 }
  0x63   : > { %p1589_p10 = pnand %p1588_p5, %p1582_p4 }
  0x65   : > { %1592 = shalt.err (!%p1589_p10)
}
  0x66   : > { %1370 = dma.hbm_to_vmem [thread:$0]  (!%p1811_p6), %s2157_s4, 256, %s230_s10, [#allocation12], %s1718_s27, %s1718_s27, %s1719_s30  }
  0x67   : > { %s1184_s29 = sadd.s32 4294967294, %s1713_s23   ;;  %s35_s14 = sadd.s32 1, %s1709_s22 }
  0x68   : > { %p37_p8 = scmp.ge.s32.totalorder %s35_s14, 2  ;;  %s42_s9 = sadd.s32 1, %s1701_s20 }
  0x69   : > { %p49_p1 = scmp.ne.s32.totalorder %s1701_s20, %s1697_s19  ;;  %p50_p3 = scmp.eq.s32.totalorder %s1713_s23, 0 }
  0x6a   : > { %s2184_s14 = smov (%p37_p8, %s35_s14), 0  ;;  %p55_p12 = scmp.ne.s32.totalorder %s1697_s19, %s1693_s18 }
  0x6b   : > { %p1928_p11 = por %p50_p3, %p49_p1  ;;  %s39_s27 = ssub.s32 %s1709_s22, %s2184_s14 }
  0x6c   : > { %p165_p6 = scmp.eq.s32.totalorder %s1183_s24, 1  ;;  %p40_p13 = scmp.eq.s32.totalorder %s39_s27, 0 }
  0x6d   : > { %p2168_p0 = scmp.ne.s32.totalorder %s2163_s25, 0  ;;  %p171_p7 = scmp.eq.s32.totalorder %s1184_s29, 1 }
  0x6e   : > { %p1944_p4 = por %p165_p6, %p49_p1  ;;  %p1383_p5 = scmp.lt.s32.totalorder %s1713_s23, 2 }
  0x6f   : > { %p1940_p2 = por %p2168_p0, %p55_p12  ;;  %p1951_p9 = por %p171_p7, %p55_p12 }
  0x70   : > { %s2170_s10 = scalar_select %p1944_p4, 1, 0 }
  0x71   : > { %s1949_s12 = scalar_select %p40_p13, %s1701_s20, %s42_s9  }
  0x72   : > { %s2171_s13 = scalar_select %p1951_p9, 1, 0 }
  0x73   : > { %s243_s15 = sand.u32 1, %s1701_s20   ;;  %s1192_s24 = sshll.u32 %s1709_s22, 7 }
  0x74   : > { %s1191_s16 = sshll.u32 %s243_s15, 3  ;;  %s1961_s8 = scalar_lea.hbm %s2153_s0, %s1192_s24 }
  0x75   : > { %s247_s6 = scalar_lea.vmem [#allocation5], %s1191_s16  ;;  %p1965_p10 = pnand %p1383_p5, %p1928_p11 }
  0x76   : > { %s254_s7 = sshll.u32 %s247_s6, 4  ;;  %s244_s9 = scalar_lea.sflag [#allocation6], %s243_s15  ;;  %s1969_s7 = int_to_ptr.vmem [resolvable:$true] %s254_s7 }
  0x77   : > { %s1593_s27 = scalar_lea.hbm %s1961_s8, 128  ;;  %p1595_p1 = pneg %p1965_p10 }
  0x78   : > { %p1594_p8 = scmp.ne.s32.totalorder %s1961_s8, %s1593_s27  ;;  %s1598_s11 = scalar_lea.hbm %s2153_s0, 256 }
  0x79   : > { %p1599_p11 = scmp.lt.u32.totalorder %s1961_s8, %s2153_s0  ;;  %p1600_p6 = scmp.lt.u32.totalorder %s1598_s11, %s1593_s27 }
  0x7a   : > { %p1596_p3 = pnand %p1595_p1, %p1594_p8  ;;  %p1602_p0 = scmp.lt.u32.totalorder %s1593_s27, %s1961_s8 }
  0x7b   : > { %p1601_p13 = por %p1600_p6, %p1599_p11 }
  0x7c   : > { %p1597_p12 = pneg %p1596_p3 }
  0x7d   : > { %p1603_p7 = por %p1602_p0, %p1601_p13 }
  0x7f   : > { %p1604_p5 = pnand %p1603_p7, %p1597_p12 }
  0x81   : > { %1607 = shalt.err (!%p1604_p5)
}
  0x82   : > { %s1608_s15 = scalar_lea.vmem %s1969_s7, 128  ;;  %s1721_s6 = smov [#allocation5]  }
  0x83   : > { %p1609_p8 = scmp.ne.s32.totalorder %s1969_s7, %s1608_s15  ;;  %s1613_s24 = sshll.u32 %s1721_s6, 4  ;;  %s1614_s24 = int_to_ptr.vmem [resolvable:$false] %s1613_s24 }
  0x84   : > { %s1615_s16 = scalar_lea.vmem %s1614_s24, 256  ;;  %p1616_p4 = scmp.lt.s32.totalorder %s1969_s7, %s1614_s24 }
  0x85   : > { %p1611_p3 = pnand %p1609_p8, %p1595_p1  ;;  %p1617_p11 = scmp.lt.s32.totalorder %s1615_s16, %s1608_s15 }
  0x87   : > { %p1612_p9 = pneg %p1611_p3  ;;  %p1618_p6 = por %p1617_p11, %p1616_p4 }
  0x89   : > { %p1619_p13 = pnand %p1618_p6, %p1612_p9 }
  0x8b   : > { %1622 = shalt.err (!%p1619_p13)
}
  0x8c   : > { %1374 = dma.hbm_to_vmem [thread:$0]  (!%p1965_p10), %s1961_s8, 128, %s1969_s7, %s244_s9  }
  0x8d   : > { %p2173_p12 = scmp.ne.s32.totalorder %s2164_s26, 0 }
  0x8e   : > { %s1999_s27 = sand.u32 (!%p2173_p12), 1, %s1697_s19  }
  0x8f   : > { %263 = sbr.rel (%p2173_p12) target bundleno = 1622 (0x656), region = 40  ;;  %s1194_s11 = sshll.u32 (!%p2173_p12), %s1999_s27, 3 }
  0x90   : > { %s266_s17 = scalar_lea.sflag (!%p2173_p12), [#allocation6], %s1999_s27  ;;  %s269_s28 = scalar_lea.vmem (!%p2173_p12), [#allocation5], %s1194_s11 }
  0x96   : > { %1676 = dma.done.wait (%p1940_p2), %s266_s17, 128  }
  0x97   : > { %1678 = vsyncadd (%p1940_p2), %s266_s17, 4294967168  ;;  %p2174_p4 = scmp.ne.s32.totalorder %s2163_s25, 0 }
  0x99   : > { %1680 = dma.done.wait (%p2174_p4), [#allocation9], 512  }
  0x9a   : > { %1682 = vsyncadd (%p2174_p4), [#allocation9], 4294966784 }
  0x9b   : > { %1684 = dma.done.wait (%p2174_p4), [#allocation12], 512  }
  0x9c   : > { %1686 = vsyncadd (%p2174_p4), [#allocation12], 4294966784  ;;  %v1722_v0 = vmov 0.0   ;;  %vm1723_vm0 = vmmov 0   ;;  %v1451_v1 = vld [vmem:[#allocation10] sm:$0xff]   ;;  %v1452_v2 = vld [vmem:[#allocation10 + $0x8] sm:$0xff]  }
  0x9d   : > { %1258 = vmatprep.subr.bf16.mxu0 %v1722_v0  ;;  %1262 = vmatprep.mubr.msk.bf16.mxu0 %vm1723_vm0, %v1722_v0  ;;  %v317_v3 = vld [vmem:[%s269_s28] sm:$0xff]  ;;  %v1453_v4 = vld [vmem:[#allocation8] sm:$0xff]   ;;  %vm335_vm1 = vcmask 261120   ;;  %v1454_v7 = vld [vmem:[#allocation8 + $0x8] sm:$0xff]   ;;  %vm380_vm2 = vcmask 257024   ;;  %vm507_vm3 = vcmask 64512  }
  0x9e   : > { %1266 = vmatprep.subr.bf16.mxu1 %v1722_v0  ;;  %1270 = vmatprep.mubr.msk.bf16.mxu1 %vm1723_vm0, %v1722_v0  ;;  %v318_v5 = vpack.c.bf16 %v317_v3, %v317_v3  ;;  %v1455_v6 = vld [vmem:[#allocation11] sm:$0xff]   ;;  %v1456_v8 = vld [vmem:[#allocation11 + $0x8] sm:$0xff]   ;;  %s1724_s25 = smov 112   ;;  %s1725_s26 = smov 120   ;;  %vm569_vm4 = vcmask 1043456   ;;  %vm737_vm5 = vcmask 130112  }
  0x9f   : > { %1259 = vmatpush3.bf16.msra.mxu0 %v1451_v1  ;;  %1267 = vmatpush3.bf16.msra.mxu1 %v1455_v6  ;;  %s1726_s30 = smov 104   ;;  %s1727_s8 = smov 8   ;;  %vm861_vm6 = vcmask 195712   ;;  %vm985_vm7 = vcmask 261312  }
  0xa0   : > { %1260 = vmatprep.subr.bf16.mxu0 %v1722_v0  ;;  %1268 = vmatprep.subr.bf16.mxu1 %v1722_v0  ;;  %s1728_s7 = smov 16   ;;  %s1729_s29 = smov 24  }
  0xa1   : > { %s1227_s9 = sshll.u32 %s1705_s21, 7  ;;  %s311_s15 = scalar_lea.vmem [#allocation14], %s1194_s11 }
  0xa2   : > { %s1064_s6 = sshll.u32 %s311_s15, 4  ;;  %s2103_s17 = scalar_lea.hbm %s2158_s5, %s1227_s9  ;;  %s2105_s6 = int_to_ptr.vmem [resolvable:$true] %s1064_s6 }
  0xa3   : > { %1261 = vmatpush3.bf16.msra.mxu0 %v1452_v2  ;;  %1269 = vmatpush3.bf16.msra.mxu1 %v1456_v8  ;;  %s1050_s28 = scalar_lea.sflag [#allocation7], %s1999_s27  ;;  %s1623_s21 = scalar_lea.vmem %s2105_s6, 128 }
  0xa4   : > { %1274 = vmatprep.subr.bf16.mxu0 %v1722_v0  ;;  %1282 = vmatprep.subr.bf16.mxu1 %v1722_v0  ;;  %p1624_p2 = scmp.ne.s32.totalorder %s2105_s6, %s1623_s21  ;;  %p2175_p9 = scmp.ne.s32.totalorder %s2170_s10, 0 }
  0xa5   : > { %s1730_s11 = smov [#allocation14]  }
  0xa6   : > { %1263 = vmatmul.mubr.msk.bf16.vlgmr.msra.gmra.mrb[0].mxu0 %vm335_vm1, %v318_v5  ;;  %1271 = vmatmul.mubr.msk.bf16.vlgmr.msra.gmra.mrb[0].mxu1 %vm335_vm1, %v318_v5  ;;  %p1625_p10 = pnand %p1624_p2, %p2175_p9 }
  0xa7   : > { %1275 = vmatpush3.bf16.msra.mxu0 %v1453_v4  ;;  %1278 = vmatprep.mubr.msk.bf16.mxu0 %vm1723_vm0, %v1722_v0 }
  0xa8   : > { %1276 = vmatprep.subr.bf16.mxu0 %v1722_v0  ;;  %1284 = vmatprep.mubr.msk.bf16.mxu1 %vm1723_vm0, %v1722_v0  ;;  %p1626_p1 = pneg %p1625_p10 }
  0xab   : > { %1277 = vmatpush3.bf16.msra.mxu0 %v1454_v7 }
  0xac   : > { %1288 = vmatprep.subr.bf16.mxu0 %v1722_v0 }
  0xae   : > { %1279 = vmatmul.mubr.msk.bf16.vlgmr.msra.gmra.mrb[4].mxu0 %vm335_vm1, %v318_v5 }
  0xaf   : > { %1290 = vmatprep.mubr.msk.bf16.mxu0 %vm1723_vm0, %v1722_v0 }
 0x179   : > { %v373_v9 = vpop.f32.mrb[0].mxu0  ;;  %v432_v24 = vpop.f32.mrb[0].mxu1 }
 0x17a   : > { %v379_v10 = vpack.c.bf16 %v373_v9, %v373_v9  ;;  %v1264_v11 = vpop.f32.mrb[1].mxu0  ;;  %v438_v25 = vpack.c.bf16 %v432_v24, %v432_v24  ;;  %v1272_v26 = vpop.f32.mrb[1].mxu1 }
 0x17b   : > { %v376_v12 = vpop.f32.mrb[2].mxu0  ;;  %v435_v27 = vpop.f32.mrb[2].mxu1 }
 0x17c   : > { %381 = vst.msk [vmem:[#allocation2] sm:$0xf] %vm380_vm2, %v379_v10  ;;  %v1265_v13 = vpop.f32.mrb[3].mxu0  ;;  %439 = vst.msk [vmem:[#allocation3] sm:$0xf] %vm380_vm2, %v438_v25  ;;  %v1273_v28 = vpop.f32.mrb[3].mxu1 }
 0x181   : > { %v498_v14 = vpop.f32.mrb[4].mxu0 }
 0x182   : > { %v1280_v15 = vpop.f32.mrb[5].mxu0  ;;  %v504_v21 = vpack.c.bf16 %v498_v14, %v498_v14 }
 0x183   : > { %v505_v16 = vld [vmem:[#allocation2] sm:$0xf]  ;;  %v501_v20 = vpop.f32.mrb[6].mxu0  ;;  %v506_v29 = vld [vmem:[#allocation3] sm:$0xf] }
 0x184   : > { %v1457_v17 = vld [vmem:[#allocation2] ss:$0 sps:$4 sm:$0xff]   ;;  %v512_v18 = vsel %vm507_vm3, %v505_v16, 0  ;;  %v1281_v22 = vpop.f32.mrb[7].mxu0  ;;  %v571_v30 = vsel %vm569_vm4, %v506_v29, 0 }
 0x185   : > { %v1458_v19 = vld [vmem:[#allocation2] ss:$0 sps:$4 sm:$0xff]   ;;  %1283 = vmatpush3.bf16.xpose.msra.mxu1 %v512_v18  ;;  %746 = vrot.lane.b32.xlu1 %v1457_v17, %s1724_s25  ;;  %v1460_v2 = vld [vmem:[#allocation3] ss:$0 sps:$4 sm:$0xff]  }
 0x186   : > { %622 = vrot.lane.b32.xlu0 %v1458_v19, %s1725_s26  ;;  %1294 = vmatprep.subr.bf16.mxu1 %v1722_v0  ;;  %v1459_v23 = vld [vmem:[#allocation2] ss:$0 sps:$4 sm:$0xff]   ;;  %v1461_v18 = vld [vmem:[#allocation3] ss:$0 sps:$4 sm:$0xff]  }
 0x187   : > { %1289 = vmatpush3.bf16.msra.mxu0 %v571_v30  ;;  %v1462_v22 = vld [vmem:[#allocation3] ss:$0 sps:$4 sm:$0xff]  }
 0x188   : > { %1300 = vmatprep.subr.bf16.mxu0 %v1722_v0 }
 0x189   : > { %741 = vrot.lane.b32.xlu1 %v504_v21, %s1724_s25 }
 0x18a   : > { %617 = vrot.lane.b32.xlu0 %v504_v21, %s1725_s26 }
 0x18c   : > { %1285 = vmatmul.mubr.msk.bf16.vlgmr.msra.gmra.mrb[4].mxu1 %vm507_vm3, %v504_v21 }
 0x18d   : > { %865 = vrot.lane.b32.xlu1 %v504_v21, %s1726_s30  ;;  %1296 = vmatprep.mubr.msk.bf16.mxu1 %vm1723_vm0, %v1722_v0 }
 0x18e   : > { %870 = vrot.lane.b32.xlu0 %v1459_v23, %s1726_s30 }
 0x1f7   : > { %v747_v33 = vpop.permute.xlu1 %746 }
 0x1f8   : > { %v623_v31 = vpop.permute.xlu0 %622  ;;  %v752_v35 = vsel %vm507_vm3, %v747_v33, 0 }
 0x1f9   : > { %v628_v32 = vsel %vm507_vm3, %v623_v31, 0 }
 0x1fa   : > { %1295 = vmatpush3.bf16.xpose.msra.mxu1 %v628_v32 }
 0x1fb   : > { %1306 = vmatprep.subr.bf16.mxu1 %v1722_v0  ;;  %v742_v37 = vpop.permute.xlu1 %741 }
 0x1fc   : > { %v618_v34 = vpop.permute.xlu0 %617 }
 0x1ff   : > { %v866_v39 = vpop.permute.xlu1 %865 }
 0x200   : > { %v871_v36 = vpop.permute.xlu0 %870 }
 0x201   : > { %1297 = vmatmul.mubr.msk.bf16.vlgmr.msra.gmra.mrb[8].mxu1 %vm507_vm3, %v618_v34  ;;  %v876_v38 = vsel %vm507_vm3, %v871_v36, 0 }
 0x202   : > { %1307 = vmatpush3.bf16.xpose.msra.mxu1 %v752_v35  ;;  %1308 = vmatprep.mubr.msk.bf16.mxu1 %vm1723_vm0, %v1722_v0 }
 0x203   : > { %1318 = vmatprep.subr.bf16.mxu1 %v1722_v0 }
 0x209   : > { %1309 = vmatmul.mubr.msk.bf16.vlgmr.msra.gmra.mrb[12].mxu1 %vm507_vm3, %v742_v37 }
 0x20a   : > { %1319 = vmatpush3.bf16.xpose.msra.mxu1 %v876_v38  ;;  %1320 = vmatprep.mubr.msk.bf16.mxu1 %vm1723_vm0, %v1722_v0 }
 0x20b   : > { %1330 = vmatprep.subr.bf16.mxu1 %v1722_v0 }
 0x211   : > { %1321 = vmatmul.mubr.msk.bf16.vlgmr.msra.gmra.mrb[16].mxu1 %vm507_vm3, %v866_v39 }
 0x212   : > { %1334 = vmatprep.mubr.msk.bf16.mxu1 %vm1723_vm0, %v1722_v0 }
 0x25f   : > { %v548_v40 = vpop.f32.mrb[4].mxu1 }
 0x260   : > { %v1286_v41 = vpop.f32.mrb[5].mxu1  ;;  %v554_v42 = vsel %vm507_vm3, %v548_v40, -inf }
 0x261   : > { %555 = vmax.xlane.f32.xlu0 %v554_v42  ;;  %v551_v43 = vpop.f32.mrb[6].mxu1 }
 0x262   : > { %v1287_v44 = vpop.f32.mrb[7].mxu1 }
 0x2d4   : > { %v664_v45 = vpop.f32.mrb[8].mxu1 }
 0x2d5   : > { %v1298_v46 = vpop.f32.mrb[9].mxu1  ;;  %v670_v47 = vsel %vm507_vm3, %v664_v45, -inf }
 0x2d6   : > { %671 = vmax.xlane.f32.xlu1 %v670_v47  ;;  %v667_v48 = vpop.f32.mrb[10].mxu1 }
 0x2d7   : > { %v1299_v49 = vpop.f32.mrb[11].mxu1 }
 0x2dc   : > { %v788_v50 = vpop.f32.mrb[12].mxu1 }
 0x2dd   : > { %v1310_v51 = vpop.f32.mrb[13].mxu1  ;;  %v794_v52 = vsel %vm507_vm3, %v788_v50, -inf }
 0x2de   : > { %795 = vmax.xlane.f32.xlu0 %v794_v52  ;;  %v791_v53 = vpop.f32.mrb[14].mxu1  ;;  %v1464_v51 = vld [vmem:[#allocation13 + $0x8] sm:$0xff]  }
 0x2df   : > { %v1311_v54 = vpop.f32.mrb[15].mxu1 }
 0x2e4   : > { %v912_v55 = vpop.f32.mrb[16].mxu1 }
 0x2e5   : > { %v1322_v56 = vpop.f32.mrb[17].mxu1  ;;  %v918_v57 = vsel %vm507_vm3, %v912_v55, -inf }
 0x2e6   : > { %919 = vmax.xlane.f32.xlu0 %v918_v57  ;;  %v915_v58 = vpop.f32.mrb[18].mxu1 }
 0x2e7   : > { %v1323_v59 = vpop.f32.mrb[19].mxu1 }
 0x2ee   : > { %v556_v60 = vpop.xlane.xlu0 %555 }
 0x2ef   : > { %v557_v61 = vsub.f32 %v548_v40, %v556_v60 }
 0x2f1   : > { %v558_v62 = vmul.f32 1.442695, %v557_v61 }
 0x2f3   : > { %1465 = vpow2.f32 %v558_v62 }
 0x2fd   : > { %v1466_v63 = vpop.eup %1465 }
 0x2fe   : > { %v560_v1 = vsel %vm507_vm3, %v1466_v63, 0.0 }
 0x2ff   : > { %561 = vadd.xlane.f32.xlu1 %v560_v1 }
 0x310   : > { %685 = vrot.lane.b32.xlu1 %v1460_v2, %s1725_s26 }
 0x363   : > { %v672_v3 = vpop.xlane.xlu1 %671 }
 0x364   : > { %v673_v4 = vsub.f32 %v664_v45, %v672_v3 }
 0x366   : > { %v674_v5 = vmul.f32 1.442695, %v673_v4 }
 0x368   : > { %1467 = vpow2.f32 %v674_v5 }
 0x36b   : > { %v796_v6 = vpop.xlane.xlu0 %795 }
 0x36c   : > { %v797_v7 = vsub.f32 %v788_v50, %v796_v6  ;;  %v1463_v50 = vld [vmem:[#allocation13] sm:$0xff]  }
 0x36d   : > { %1331 = vmatpush3.bf16.msra.mxu1 %v1463_v50 }
 0x36e   : > { %v798_v8 = vmul.f32 1.442695, %v797_v7  ;;  %1332 = vmatprep.subr.bf16.mxu1 %v1722_v0 }
 0x370   : > { %1469 = vpow2.f32 %v798_v8 }
 0x371   : > { %1333 = vmatpush3.bf16.msra.mxu1 %v1464_v51 }
 0x372   : > { %v1468_v9 = vpop.eup %1467 }
 0x373   : > { %v920_v10 = vpop.xlane.xlu0 %919  ;;  %v676_v11 = vsel %vm507_vm3, %v1468_v9, 0.0 }
 0x374   : > { %v921_v12 = vsub.f32 %v912_v55, %v920_v10  ;;  %677 = vadd.xlane.f32.xlu0 %v676_v11 }
 0x376   : > { %v922_v13 = vmul.f32 1.442695, %v921_v12 }
 0x378   : > { %1471 = vpow2.f32 %v922_v13 }
 0x37a   : > { %v1470_v14 = vpop.eup %1469 }
 0x37b   : > { %v800_v15 = vsel %vm507_vm3, %v1470_v14, 0.0 }
 0x37c   : > { %801 = vadd.xlane.f32.xlu1 %v800_v15 }
 0x382   : > { %v1472_v16 = vpop.eup %1471 }
 0x383   : > { %v924_v17 = vsel %vm507_vm3, %v1472_v16, 0.0 }
 0x384   : > { %925 = vadd.xlane.f32.xlu0 %v924_v17 }
 0x38c   : > { %v562_v19 = vpop.xlane.xlu1 %561 }
 0x38d   : > { %1473 = vrcp.f32 %v562_v19  ;;  %933 = vrot.lane.b32.xlu1 %v1461_v18, %s1726_s30 }
 0x390   : > { %v686_v23 = vpop.permute.xlu1 %685 }
 0x391   : > { %v691_v25 = vsel %vm569_vm4, %v686_v23, 0 }
 0x397   : > { %v1474_v20 = vpop.eup %1473 }
 0x398   : > { %v564_v21 = vmul.f32 %v1474_v20, %v1466_v63 }
 0x39a   : > { %809 = vrot.lane.b32.xlu0 %v1462_v22, %s1724_s25  ;;  %v565_v24 = vpack.c.bf16 %v564_v21, %v564_v21  ;;  %s1627_s25 = sshll.u32 %s1730_s11, 4  ;;  %s1628_s25 = int_to_ptr.vmem [resolvable:$false] %s1627_s25 }
 0x39b   : > { %s1629_s26 = scalar_lea.vmem %s1628_s25, 256  ;;  %p1630_p0 = scmp.lt.s32.totalorder %s2105_s6, %s1628_s25 }
 0x39c   : > { %1291 = vmatmul.mubr.msk.bf16.vlgmr.msra.gmra.mrb[8].mxu0 %vm507_vm3, %v565_v24  ;;  %p1631_p7 = scmp.lt.s32.totalorder %s1629_s26, %s1623_s21 }
 0x39d   : > { %1301 = vmatpush3.bf16.msra.mxu0 %v691_v25  ;;  %1302 = vmatprep.mubr.msk.bf16.mxu0 %vm1723_vm0, %v1722_v0 }
 0x39e   : > { %1312 = vmatprep.subr.bf16.mxu0 %v1722_v0  ;;  %p1632_p5 = por %p1631_p7, %p1630_p0 }
 0x3a0   : > { %p1633_p8 = pnand %p1632_p5, %p1626_p1 }
 0x401   : > { %v678_v26 = vpop.xlane.xlu0 %677 }
 0x402   : > { %1475 = vrcp.f32 %v678_v26 }
 0x409   : > { %v802_v27 = vpop.xlane.xlu1 %801 }
 0x40a   : > { %1477 = vrcp.f32 %v802_v27 }
 0x40c   : > { %v1476_v28 = vpop.eup %1475 }
 0x40d   : > { %v680_v29 = vmul.f32 %v1476_v28, %v1468_v9  ;;  %v934_v36 = vpop.permute.xlu1 %933 }
 0x40e   : > { %v939_v38 = vsel %vm569_vm4, %v934_v36, 0 }
 0x40f   : > { %v681_v30 = vpack.c.bf16 %v680_v29, %v680_v29 }
 0x411   : > { %1303 = vmatmul.mubr.msk.bf16.vlgmr.msra.gmra.mrb[12].mxu0 %vm507_vm3, %v681_v30  ;;  %v926_v31 = vpop.xlane.xlu0 %925 }
 0x412   : > { %1479 = vrcp.f32 %v926_v31  ;;  %1314 = vmatprep.mubr.msk.bf16.mxu0 %vm1723_vm0, %v1722_v0 }
 0x414   : > { %v1478_v32 = vpop.eup %1477 }
 0x415   : > { %v804_v33 = vmul.f32 %v1478_v32, %v1470_v14  ;;  %v810_v34 = vpop.permute.xlu0 %809 }
 0x416   : > { %v815_v35 = vsel %vm569_vm4, %v810_v34, 0 }
 0x417   : > { %1313 = vmatpush3.bf16.msra.mxu0 %v815_v35  ;;  %v805_v37 = vpack.c.bf16 %v804_v33, %v804_v33 }
 0x418   : > { %1324 = vmatprep.subr.bf16.mxu0 %v1722_v0 }
 0x41a   : > { %1315 = vmatmul.mubr.msk.bf16.vlgmr.msra.gmra.mrb[16].mxu0 %vm507_vm3, %v805_v37 }
 0x41b   : > { %1325 = vmatpush3.bf16.msra.mxu0 %v939_v38  ;;  %1326 = vmatprep.mubr.msk.bf16.mxu0 %vm1723_vm0, %v1722_v0 }
 0x41c   : > { %v1480_v39 = vpop.eup %1479 }
 0x41d   : > { %v928_v40 = vmul.f32 %v1480_v39, %v1472_v16 }
 0x41f   : > { %v929_v41 = vpack.c.bf16 %v928_v40, %v928_v40 }
 0x422   : > { %1327 = vmatmul.mubr.msk.bf16.vlgmr.msra.gmra.mrb[20].mxu0 %vm507_vm3, %v929_v41 }
 0x46f   : > { %v607_v42 = vpop.f32.mrb[8].mxu0 }
 0x470   : > { %613 = vst.msk [vmem:[#allocation4] sm:$0xff] %vm507_vm3, %v607_v42  ;;  %v1292_v43 = vpop.f32.mrb[9].mxu0 }
 0x471   : > { %v610_v44 = vpop.f32.mrb[10].mxu0 }
 0x472   : > { %v1293_v45 = vpop.f32.mrb[11].mxu0 }
 0x4e4   : > { %v727_v46 = vpop.f32.mrb[12].mxu0 }
 0x4e5   : > { %734 = vrot.lane.b32.xlu1 %v727_v46, %s1727_s8  ;;  %v1304_v47 = vpop.f32.mrb[13].mxu0 }
 0x4e6   : > { %v730_v48 = vpop.f32.mrb[14].mxu0 }
 0x4e7   : > { %v1305_v49 = vpop.f32.mrb[15].mxu0 }
 0x4ed   : > { %v851_v52 = vpop.f32.mrb[16].mxu0 }
 0x4ee   : > { %858 = vrot.lane.b32.xlu0 %v851_v52, %s1728_s7  ;;  %v1316_v53 = vpop.f32.mrb[17].mxu0 }
 0x4ef   : > { %v854_v54 = vpop.f32.mrb[18].mxu0 }
 0x4f0   : > { %v1317_v55 = vpop.f32.mrb[19].mxu0 }
 0x4f5   : > { %v975_v56 = vpop.f32.mrb[20].mxu0 }
 0x4f6   : > { %982 = vrot.lane.b32.xlu1 %v975_v56, %s1729_s29  ;;  %v1328_v57 = vpop.f32.mrb[21].mxu0 }
 0x4f7   : > { %v978_v58 = vpop.f32.mrb[22].mxu0 }
 0x4f8   : > { %v1329_v59 = vpop.f32.mrb[23].mxu0 }
 0x557   : > { %v735_v60 = vpop.permute.xlu1 %734 }
 0x558   : > { %738 = vst.msk [vmem:[#allocation4] sm:$0xff] %vm737_vm5, %v735_v60 }
 0x560   : > { %v859_v0 = vpop.permute.xlu0 %858 }
 0x561   : > { %862 = vst.msk [vmem:[#allocation4] sm:$0xff] %vm861_vm6, %v859_v0 }
 0x568   : > { %v983_v61 = vpop.permute.xlu1 %982 }
 0x569   : > { %986 = vst.msk [vmem:[#allocation4] sm:$0xff] %vm985_vm7, %v983_v61 }
 0x570   : > { %v987_v62 = vld [vmem:[#allocation4] sm:$0xff] }
 0x571   : > { %v988_v63 = vpack.c.bf16 %v987_v62, %v987_v62 }
 0x573   : > { %1335 = vmatmul.mubr.msk.bf16.vlgmr.msra.gmra.mrb[20].mxu1 %vm335_vm1, %v988_v63 }
 0x646   : > { %v1042_v1 = vpop.f32.mrb[20].mxu1 }
 0x647   : > { %1048 = vst.msk [vmem:[%s311_s15] sm:$0xff] %vm335_vm1, %v1042_v1  ;;  %v1336_v2 = vpop.f32.mrb[21].mxu1 }
 0x648   : > { %v1045_v3 = vpop.f32.mrb[22].mxu1 }
 0x649   : > { %1636 = shalt.err (!%p1633_p8)
}
 0x64a   : > { %s1637_s27 = scalar_lea.hbm %s2103_s17, 128  ;;  %s1641_s7 = scalar_lea.hbm %s2158_s5, 256 }
 0x64b   : > { %p1638_p3 = scmp.ne.s32.totalorder %s2103_s17, %s1637_s27  ;;  %p1642_p13 = scmp.lt.u32.totalorder %s2103_s17, %s2158_s5 }
 0x64c   : > { %p1643_p12 = scmp.lt.u32.totalorder %s1641_s7, %s1637_s27  ;;  %p1645_p2 = scmp.lt.u32.totalorder %s1637_s27, %s2103_s17 }
 0x64d   : > { %p1639_p11 = pnand %p1638_p3, %p2175_p9 }
 0x64e   : > { %p1644_p4 = por %p1643_p12, %p1642_p13 }
 0x64f   : > { %p1640_p6 = pneg %p1639_p11 }
 0x650   : > { %p1646_p10 = por %p1645_p2, %p1644_p4 }
 0x652   : > { %p1647_p1 = pnand %p1646_p10, %p1640_p6 }
 0x654   : > { %1650 = shalt.err (!%p1647_p1)
}
 0x655   : > { %1356 = dma.vmem_to_hbm [thread:$0]  (%p2175_p9), %s2105_s6, 128, %s2103_s17, %s1050_s28   ;;  %v1337_v4 = vpop.f32.mrb[23].mxu1 }
 0x656 PF: > { %s1076_s15 = sand.u32 1, %s1693_s18   ;;  %p2176_p0 = scmp.ne.s32.totalorder %s2171_s13, 0 }
 0x657   : > { %p2177_p7 = scmp.ge.s32.totalorder %s1713_s23, 2  ;;  %s1077_s24 = scalar_lea.sflag [#allocation7], %s1076_s15 }
 0x659   : > { %p1376_p5 = pnand %p2177_p7, %p2176_p0 }
 0x65b   : > { %1688 = dma.done.wait (!%p1376_p5), %s1077_s24, 128  }
 0x65c   : > { %1690 = vsyncadd (!%p1376_p5), %s1077_s24, 4294967168  ;;  %s23_s23 = sadd.s32 1, %s1713_s23   ;;  %s2178_s18 = smov %s1697_s19 }
 0x65d   : > { %p20_p8 = scmp.ge.s32.totalorder %s23_s23, 4   ;;  %s2179_s19 = smov %s1701_s20 }
 0x65e   : > { %s2180_s20 = smov %s1949_s12  ;;  %s2181_s21 = smov %s1709_s22 }
 0x65f   : > { %s2182_s22 = smov %s2184_s14  ;;  %22 = sbr.rel (!%p20_p8) target bundleno = 8 (0x8), region = 106 }
 0x666   :  { %1082 = vsyncpa [#allocation6], 1 }
 0x667   :  { %1084 = vsyncpa [#allocation6 + $0x1], 1 }
 0x668   :  { %1085 = vsyncpa [#allocation9], 1 }
 0x669   :  { %1086 = vsyncpa [#allocation12], 1 }
 0x66a   :  { %1087 = vsyncpa [#allocation7], 1 }
 0x66b   :  { %1089 = vsyncpa [#allocation7 + $0x1], 1 }

</bundles_post_ra>
